<compile_context>
chip_gen: v7x
topology: tpu7x:2x2x1
jax: 0.10.0
libtpu: 0.0.40
codegen_flags: <defaults>
</compile_context>

<pallas_src>
import jax
import jax.numpy as jnp
from jax.experimental import pallas as pl
from jax.experimental.pallas import tpu as pltpu

LANE = 128
SUBLANE = 8


def _round_up(x, m):
    return ((x + m - 1) // m) * m


def _num_tensorcores():
    """Best-effort TensorCore count (v7x has 2 per chip); safe fallback = 1."""
    try:
        info = pltpu.get_tpu_info()
        for name in ("num_cores", "num_tensorcores", "tensorcores_per_chip",
                     "cores_per_chip"):
            v = getattr(info, name, None)
            if v:
                return int(v)
    except Exception:
        pass
    return 1


def _user_embed_kernel(idx_ref, tab_ref, out_ref):
    """One multi-hot MXU matmul producing the concatenated (Bt, C) embedding.

    idx_ref : (Bt, 4) int32 — indices pre-shifted by per-feature row offsets
                              (padded rows carry -1 -> all-zero output row).
    tab_ref : (R, C)  f32   — block-diagonal combined embedding table.
    out_ref : (Bt, C) f32   — lane-dense concatenated output (single store).
    """
    b = idx_ref.shape[0]
    r = tab_ref.shape[0]
    idx = idx_ref[...]                                          # (Bt, 4)
    cols = jax.lax.broadcasted_iota(jnp.int32, (b, r), 1)       # (Bt, R), built once
    # Multi-hot: one set column per feature per row (row blocks are disjoint).
    # Static Python loop of length 4 -> fully unrolled (do NOT use fori_loop).
    hot = cols == idx[:, 0:1]
    for k in range(1, 4):
        hot = hot | (cols == idx[:, k:k + 1])
    onehot = hot.astype(tab_ref.dtype)                          # exact 0/1 weights
    # Single MXU matmul directly produces the concatenation of the 4 lookups.
    # HIGHEST precision: exact parity with a real gather across MXU generations.
    out_ref[...] = jnp.dot(
        onehot, tab_ref[...],
        preferred_element_type=jnp.float32,
        precision=jax.lax.Precision.HIGHEST,
    ).astype(out_ref.dtype)


def build_combined_table(gender_tab, age_tab, occupation_tab, area_tab, *,
                         dtype=jnp.float32):
    """Pack the 4 tables into one block-diagonal (R, C) table (do once).

    Rows padded to a multiple of 8 (sublane), columns padded to a multiple of
    128 (lane) so the kernel output store is always full-width/unmasked.
    Returns (combined_table, row_offsets, out_dim) with out_dim = 4*d.
    """
    tables = (gender_tab, age_tab, occupation_tab, area_tab)
    d = int(gender_tab.shape[1])
    counts = [int(t.shape[0]) for t in tables]
    offsets, off = [], 0
    for n in counts:
        offsets.append(off)
        off += n
    r = _round_up(off, SUBLANE)
    out_dim = 4 * d
    c = _round_up(out_dim, LANE)
    combined = jnp.zeros((r, c), dtype=dtype)
    for k, t in enumerate(tables):
        combined = combined.at[offsets[k]:offsets[k] + counts[k],
                               k * d:(k + 1) * d].set(t.astype(dtype))
    return combined, tuple(offsets), out_dim


def user_embeddings(gender_idx, age_idx, occupation_idx, area_idx,
                    combined_tab, row_offsets, out_dim=None, *,
                    b_tile=None, tiny_batch_xla_fallback=0):
    """Mirrors user.forward(gender, age, occupation, area) -> (B, 4*d)."""
    b = int(gender_idx.shape[0])
    r, c = combined_tab.shape
    if out_dim is None:
        out_dim = c

    # Pack the 4 index vectors into one (B, 4) int32 operand and shift each
    # feature's indices into its row block (host-side layout plumbing).
    idx = jnp.stack([gender_idx, age_idx, occupation_idx, area_idx],
                    axis=1).astype(jnp.int32)
    idx = idx + jnp.asarray(row_offsets, dtype=jnp.int32)[None, :]

    # Optional launch-overhead bypass for tiny batches (disabled by default so
    # the Pallas path is always exercised; enable when this op is not fused).
    if b <= tiny_batch_xla_fallback:
        d = out_dim // 4
        parts = [jnp.take(combined_tab[:, k * d:(k + 1) * d], idx[:, k], axis=0)
                 for k in range(4)]
        return jnp.concatenate(parts, axis=1)[:, :out_dim]

    # --- Batch tile selection -------------------------------------------------
    # Single block up to 512 rows (per-block working set is tiny, so the only
    # cost of big tiles is vreg pressure; >512 would need a chunked one-hot).
    # On >=2-TC chips (v7x) split large batches into >=2 "parallel" blocks so
    # both TensorCores get work; the 512-row cap already does this for B>512.
    if b_tile is None:
        b_tile = min(_round_up(b, SUBLANE), 512)
        if b >= 256 and _num_tensorcores() >= 2:
            b_tile = min(b_tile, _round_up(pl.cdiv(b, 2), SUBLANE))
    else:
        b_tile = _round_up(int(b_tile), SUBLANE)
    n_blocks = pl.cdiv(b, b_tile)
    b_pad = n_blocks * b_tile
    if b_pad != b:
        # Pad with -1: never matches the column iota, so padded rows are zero.
        idx = jnp.pad(idx, ((0, b_pad - b), (0, 0)), constant_values=-1)

    out = pl.pallas_call(
        _user_embed_kernel,
        out_shape=jax.ShapeDtypeStruct((b_pad, c), jnp.float32),
        grid_spec=pltpu.PrefetchScalarGridSpec(
            num_scalar_prefetch=0,
            grid=(n_blocks,),
            in_specs=[
                pl.BlockSpec((b_tile, 4), lambda i: (i, 0)),
                # Constant block index: Pallas keeps the table resident in VMEM
                # across grid steps (no re-DMA per block).
                pl.BlockSpec((r, c), lambda i: (0, 0)),
            ],
            out_specs=pl.BlockSpec((b_tile, c), lambda i: (i, 0)),
        ),
        compiler_params=pltpu.CompilerParams(
            dimension_semantics=("parallel",)),
    )(idx, combined_tab)
    return out[:b, :out_dim]


def _init_table(key, num_embeddings, embedding_dim):
    # nn.Embedding default init: N(0, 1)
    return jax.random.normal(key, (num_embeddings, embedding_dim),
                             dtype=jnp.float32)


if __name__ == "__main__":
    # Small, deterministic config consistent with MeLU's user module.
    config = dict(num_gender=2, num_age=7, num_occupation=21,
                  num_zipcode=64, embedding_dim=32)

    key = jax.random.PRNGKey(0)
    k_g, k_a, k_o, k_z, k_idx = jax.random.split(key, 5)

    gender_tab = _init_table(k_g, config['num_gender'], config['embedding_dim'])
    age_tab = _init_table(k_a, config['num_age'], config['embedding_dim'])
    occupation_tab = _init_table(k_o, config['num_occupation'], config['embedding_dim'])
    area_tab = _init_table(k_z, config['num_zipcode'], config['embedding_dim'])

    # One-time table packing (parameters).
    combined_tab, row_offsets, out_dim = build_combined_table(
        gender_tab, age_tab, occupation_tab, area_tab)

    def make_indices(k, batch):
        kg, ka, ko, kz = jax.random.split(k, 4)
        return (jax.random.randint(kg, (batch,), 0, config['num_gender'], jnp.int32),
                jax.random.randint(ka, (batch,), 0, config['num_age'], jnp.int32),
                jax.random.randint(ko, (batch,), 0, config['num_occupation'], jnp.int32),
                jax.random.randint(kz, (batch,), 0, config['num_zipcode'], jnp.int32))

    def reference(g, a, o, z):
        return jnp.concatenate([gender_tab[g], age_tab[a],
                                occupation_tab[o], area_tab[z]], axis=1)

    # Case 1: small batch (single 8-row block, the typical MeLU support set).
    g, a, o, z = make_indices(jax.random.fold_in(k_idx, 0), 8)
    out = jax.block_until_ready(
        user_embeddings(g, a, o, z, combined_tab, row_offsets, out_dim))
    assert out.shape == (8, 4 * config['embedding_dim'])
    assert jnp.allclose(out, reference(g, a, o, z), atol=1e-5), \
        "mismatch vs reference gather (case 1)"

    # Case 2: non-multiple-of-8 batch with a small explicit tile — exercises
    # the padding (-1 rows) and multi-block "parallel" grid path.
    g, a, o, z = make_indices(jax.random.fold_in(k_idx, 1), 50)
    out = jax.block_until_ready(
        user_embeddings(g, a, o, z, combined_tab, row_offsets, out_dim, b_tile=16))
    assert out.shape == (50, 4 * config['embedding_dim'])
    assert jnp.allclose(out, reference(g, a, o, z), atol=1e-5), \
        "mismatch vs reference gather (case 2)"

    print("KERNEL_OK")
</pallas_src>

<mosaic_0001>
module attributes {stable_mosaic.version = 11 : i64} {
  func.func @_user_embed_kernel(%arg0: i32, %arg1: memref<8x4xi32, #tpu.memory_space<vmem>>, %arg2: memref<96x128xf32, #tpu.memory_space<vmem>>, %arg3: memref<8x128xf32, #tpu.memory_space<vmem>>) attributes {dimension_semantics = [#tpu.dimension_semantics<parallel>], iteration_bounds = array<i64: 1>, scalar_prefetch = 0 : i64, scratch_operands = 0 : i64, tpu.core_type = #tpu.core_type<tc>, window_params = [{transform_indices = @transform_0, window_bounds = array<i64: 8, 4>}, {pipeline_mode = #tpu.pipeline_mode<synchronous>, transform_indices = @transform_1, window_bounds = array<i64: 96, 128>}, {transform_indices = @transform_2, window_bounds = array<i64: 8, 128>}]} {
    %c0 = arith.constant 0 : index
    %c0_0 = arith.constant 0 : index
    %0 = vector.load %arg1[%c0, %c0_0] : memref<8x4xi32, #tpu.memory_space<vmem>>, vector<8x4xi32>
    %1 = tpu.iota {dimensions = array<i32: 1>} : vector<8x96xi32>
    %2 = vector.extract_strided_slice %0 {offsets = [0, 0], sizes = [8, 1], strides = [1, 1]} : vector<8x4xi32> to vector<8x1xi32>
    %3 = vector.broadcast %2 : vector<8x1xi32> to vector<8x96xi32>
    %4 = arith.cmpi eq, %1, %3 : vector<8x96xi32>
    %5 = vector.extract_strided_slice %0 {offsets = [0, 1], sizes = [8, 1], strides = [1, 1]} : vector<8x4xi32> to vector<8x1xi32>
    %6 = vector.broadcast %5 : vector<8x1xi32> to vector<8x96xi32>
    %7 = arith.cmpi eq, %1, %6 : vector<8x96xi32>
    %8 = arith.ori %4, %7 : vector<8x96xi1>
    %9 = vector.extract_strided_slice %0 {offsets = [0, 2], sizes = [8, 1], strides = [1, 1]} : vector<8x4xi32> to vector<8x1xi32>
    %10 = vector.broadcast %9 : vector<8x1xi32> to vector<8x96xi32>
    %11 = arith.cmpi eq, %1, %10 : vector<8x96xi32>
    %12 = arith.ori %8, %11 : vector<8x96xi1>
    %13 = vector.extract_strided_slice %0 {offsets = [0, 3], sizes = [8, 1], strides = [1, 1]} : vector<8x4xi32> to vector<8x1xi32>
    %14 = vector.broadcast %13 : vector<8x1xi32> to vector<8x96xi32>
    %15 = arith.cmpi eq, %1, %14 : vector<8x96xi32>
    %16 = arith.ori %12, %15 : vector<8x96xi1>
    %17 = arith.extui %16 : vector<8x96xi1> to vector<8x96xi32>
    %18 = arith.sitofp %17 : vector<8x96xi32> to vector<8x96xf32>
    %c0_1 = arith.constant 0 : index
    %c0_2 = arith.constant 0 : index
    %19 = vector.load %arg2[%c0_1, %c0_2] : memref<96x128xf32, #tpu.memory_space<vmem>>, vector<96x128xf32>
    %cst = arith.constant dense<0.000000e+00> : vector<8x128xf32>
    %20 = tpu.matmul %18, %19, %cst {dimension_numbers = #tpu.dot_dimension_numbers<[1], [0], [0], [1], [0, 0, 1, 1], [], []>, precision = #tpu.contract_precision<fp32>} : vector<8x96xf32>, vector<96x128xf32>, vector<8x128xf32> -> vector<8x128xf32>
    %c0_3 = arith.constant 0 : index
    %c0_4 = arith.constant 0 : index
    %21 = vector.load %arg3[%c0_3, %c0_4] : memref<8x128xf32, #tpu.memory_space<vmem>>, vector<8x128xf32>
    tpu.vector_store %arg3[%c0_3, %c0_4], %20 {strides = array<i32>} : memref<8x128xf32, #tpu.memory_space<vmem>>, vector<8x128xf32>,
    return
  }
  func.func @transform_0(%arg0: i32) -> (i32, i32) {
    %c0_i32 = arith.constant 0 : i32
    %c0_i32_0 = arith.constant 0 : i32
    return %arg0, %c0_i32 : i32, i32
  }
  func.func @transform_1(%arg0: i32) -> (i32, i32) {
    %c0_i32 = arith.constant 0 : i32
    %c0_i32_0 = arith.constant 0 : i32
    %c0_i32_1 = arith.constant 0 : i32
    return %c0_i32, %c0_i32_0 : i32, i32
  }
  func.func @transform_2(%arg0: i32) -> (i32, i32) {
    %c0_i32 = arith.constant 0 : i32
    %c0_i32_0 = arith.constant 0 : i32
    return %arg0, %c0_i32 : i32, i32
  }
}

</mosaic_0001>

<bundles_post_ra>
// kernel: tpu_custom_call.1
= control target key start
LH: loop header
LB: loop body
LE: loop exit
PB: predicated region body
PF: predicated region fallthrough
CT: control target
= control target key end

     0   :  { %7 = vsyncpa [#allocation3], 0  ;;  %s1328_s0 = inlined_call_operand.vmem [shape: s32[8,4], index: 0, kind: input, shape index: {}]   ;;  %s1329_s1 = inlined_call_operand.hbm [shape: f32[96,128], index: 1, kind: input, shape index: {}]   ;;  %s1330_s2 = inlined_call_operand.hbm [shape: f32[8,128], index: 2, kind: output, shape index: {}]  }
   0x1   :  { %8 = vsyncpa [#allocation4], 0  ;;  %s1096_s9 = smov [#allocation2]   ;;  %s1048_s13 = scalar_lea.hbm %s1329_s1, 1536 }
   0x2   :  { %s16_s10 = sshll.u32 %s1096_s9, 4  ;;  %p1049_p0 = scmp.ne.s32.totalorder %s1329_s1, %s1048_s13  ;;  %s17_s10 = int_to_ptr.vmem [resolvable:$true] %s16_s10 }
   0x3   :  { %p1052_p1 = scmp.lt.u32.totalorder %s1048_s13, %s1329_s1 }
   0x5   :  { %p1054_p2 = pnand %p1052_p1, %p1049_p0 }
   0x7   :  { %1057 = shalt.err (!%p1054_p2)
}
   0x8   :  { %s1058_s18 = scalar_lea.vmem %s17_s10, 1536  ;;  %p1063_p4 = scmp.lt.s32.totalorder %s17_s10, %s17_s10 }
   0x9   :  { %p1059_p3 = scmp.ne.s32.totalorder %s17_s10, %s1058_s18  ;;  %p1064_p5 = scmp.lt.s32.totalorder %s1058_s18, %s1058_s18 }
   0xb   :  { %p1065_p6 = por %p1064_p5, %p1063_p4 }
   0xd   :  { %p1066_p7 = pnand %p1065_p6, %p1059_p3 }
   0xf   :  { %1069 = shalt.err (!%p1066_p7)
}
  0x10   :  { %s1097_s19 = smov 128   ;;  %s1098_s20 = smov 8  }
  0x11   :  { %22 = dma.hbm_to_vmem [thread:$0]  %s1329_s1, 1536, %s17_s10, [#allocation3], %s1097_s19, %s1097_s19, %s1098_s20  }
  0x12   :  { %1092 = dma.done.wait [#allocation3], 1536  }
  0x13   :  { %1093 = vsyncadd [#allocation3], 4294965760  ;;  %v1099_v0 = vmov 0   ;;  %v1100_v1 = vmov 2   ;;  %v1101_v2 = vmov 0.0|0.0   ;;  %v26_v3 = vld [vmem:[%s1328_s0] sm:$0xff] }
  0x14   :  { %1043 = vset.pattern.permute.xlu0 %v1099_v0  ;;  %1045 = vset.pattern.permute.xlu1 %v1100_v1  ;;  %v50_v4 = vld [vmem:[#allocation2] sm:$0xff]  ;;  %v51_v5 = vld [vmem:[#allocation2 + $0x8] sm:$0xff]  ;;  %v52_v8 = vld [vmem:[#allocation2 + $0x10] sm:$0xff]  ;;  %v1102_v24 = vmov 1   ;;  %v1103_v25 = vmov 3   ;;  %vm1104_vm0 = vmmov 0  }
  0x15   :  { %969 = vmatprep.subr.bf16.mxu0 %v1101_v2  ;;  %915 = vmatprep.subr.bf16.mxu1 %v1101_v2  ;;  %v67_v6 = vand.u32 4294901760, %v50_v4  ;;  %v70_v7 = vand.u32 4294901760, %v51_v5  ;;  %v53_v9 = vld [vmem:[#allocation2 + $0x18] sm:$0xff]  ;;  %v54_v10 = vld [vmem:[#allocation2 + $0x20] sm:$0xff]  ;;  %v73_v11 = vand.u32 4294901760, %v52_v8  ;;  %v55_v13 = vld [vmem:[#allocation2 + $0x28] sm:$0xff] }
  0x16   :  { %30 = vperm.xlu0 %1043, %v26_v3   ;;  %39 = vperm.xlu1 %1045, %v26_v3   ;;  %v76_v12 = vand.u32 4294901760, %v53_v9  ;;  %v79_v14 = vand.u32 4294901760, %v54_v10  ;;  %v56_v15 = vld [vmem:[#allocation2 + $0x30] sm:$0xff]  ;;  %v57_v16 = vld [vmem:[#allocation2 + $0x38] sm:$0xff]  ;;  %v82_v20 = vand.u32 4294901760, %v55_v13  ;;  %v58_v32 = vld [vmem:[#allocation2 + $0x40] sm:$0xff] }
  0x17   :  { %v1139_v17 = vpack.c.bf16 %v70_v7, %v67_v6  ;;  %v1141_v18 = vsub.f32 %v50_v4, %v67_v6  ;;  %v1143_v19 = vsub.f32 %v51_v5, %v70_v7  ;;  %v1145_v21 = vsub.f32 %v52_v8, %v73_v11  ;;  %v59_v33 = vld [vmem:[#allocation2 + $0x48] sm:$0xff]  ;;  %v60_v34 = vld [vmem:[#allocation2 + $0x50] sm:$0xff]  ;;  %v61_v35 = vld [vmem:[#allocation2 + $0x58] sm:$0xff]  ;;  %s1106_s0 = smov [#allocation5]  }
  0x18   :  { %v1147_v22 = vsub.f32 %v53_v9, %v76_v12  ;;  %v1149_v23 = vsub.f32 %v54_v10, %v79_v14  ;;  %v1151_v26 = vsub.f32 %v55_v13, %v82_v20  ;;  %v85_v27 = vand.u32 4294901760, %v56_v15  ;;  %s662_s1 = sshll.u32 %s1106_s0, 4  ;;  %s663_s1 = int_to_ptr.vmem [resolvable:$true] %s662_s1 }
  0x19   :  { %v88_v28 = vand.u32 4294901760, %v57_v16  ;;  %971 = vmatpush3.bf16.msra.mxu0 %v1139_v17  ;;  %917 = vmatpush3.bf16.msra.mxu1 %v1139_v17  ;;  %v1155_v29 = vpack.c.bf16 %v76_v12, %v73_v11  ;;  %v91_v36 = vand.u32 4294901760, %v58_v32  ;;  %v94_v37 = vand.u32 4294901760, %v59_v33  ;;  %s1070_s25 = scalar_lea.vmem %s663_s1, 128  ;;  %p1075_p9 = scmp.lt.s32.totalorder %s663_s1, %s663_s1 }
  0x1a   :  { %1044 = vset.pattern.permute.xlu0 %v1102_v24  ;;  %1046 = vset.pattern.permute.xlu1 %v1103_v25  ;;  %v1157_v30 = vsub.f32 %v56_v15, %v85_v27  ;;  %v97_v38 = vand.u32 4294901760, %v60_v34  ;;  %v1165_v39 = vpack.c.bf16 %v82_v20, %v79_v14  ;;  %v100_v40 = vand.u32 4294901760, %v61_v35  ;;  %p1071_p8 = scmp.ne.s32.totalorder %s663_s1, %s1070_s25  ;;  %p1076_p10 = scmp.lt.s32.totalorder %s1070_s25, %s1070_s25 }
  0x1b   :  { %34 = vperm.xlu0 %1044, %v26_v3   ;;  %44 = vperm.xlu1 %1046, %v26_v3   ;;  %v1159_v31 = vsub.f32 %v57_v16, %v88_v28  ;;  %v1169_v41 = vsub.f32 %v58_v32, %v91_v36  ;;  %v1171_v42 = vsub.f32 %v59_v33, %v94_v37  ;;  %v1105_v45 = vmov 0.0  }
  0x1c   :  { %972 = vmatprep.subr.bf16.mxu0 %v1101_v2  ;;  %918 = vmatprep.subr.bf16.mxu1 %v1101_v2  ;;  %v1173_v43 = vsub.f32 %v60_v34, %v97_v38  ;;  %v1175_v44 = vsub.f32 %v61_v35, %v100_v40  ;;  %v156_v46 = vand.u32 4294901760, %v1141_v18  ;;  %v163_v47 = vand.u32 4294901760, %v1143_v19  ;;  %p1077_p11 = por %p1076_p10, %p1075_p9 }
  0x1d   :  { %974 = vmatpush3.bf16.msra.mxu0 %v1155_v29  ;;  %920 = vmatpush3.bf16.msra.mxu1 %v1155_v29  ;;  %v1183_v48 = vpack.c.bf16 %v88_v28, %v85_v27  ;;  %v170_v54 = vand.u32 4294901760, %v1145_v21  ;;  %v177_v55 = vand.u32 4294901760, %v1147_v22  ;;  %v1195_v56 = vpack.c.bf16 %v94_v37, %v91_v36 }
  0x1e   :  { %975 = vmatprep.subr.bf16.mxu0 %v1101_v2  ;;  %921 = vmatprep.subr.bf16.mxu1 %v1101_v2  ;;  %v1187_v49 = vpack.c.bf16 %v163_v47, %v156_v46  ;;  %v157_v50 = vsub.f32 %v1141_v18, %v156_v46  ;;  %v164_v51 = vsub.f32 %v1143_v19, %v163_v47  ;;  %v184_v62 = vand.u32 4294901760, %v1149_v23  ;;  %p1078_p12 = pnand %p1077_p11, %p1071_p8 }
  0x1f   :  { %1047 = vset.pattern.permute.xlu0 %v1103_v25  ;;  %858 = vmatprep.mubr.msk.f32.mxu0 %vm1104_vm0, %v1105_v45  ;;  %v1201_v58 = vpack.c.bf16 %v177_v55, %v170_v54  ;;  %v171_v59 = vsub.f32 %v1145_v21, %v170_v54  ;;  %v178_v60 = vsub.f32 %v1147_v22, %v177_v55  ;;  %v191_v63 = vand.u32 4294901760, %v1151_v26 }
  0x20   :  { %777 = vmatprep.mubr.msk.f32.mxu1 %vm1104_vm0, %v1105_v45  ;;  %v158_v52 = vand.u32 4294901760, %v157_v50  ;;  %v165_v53 = vand.u32 4294901760, %v164_v51  ;;  %v1209_v0 = vpack.c.bf16 %v100_v40, %v97_v38  ;;  %v185_v4 = vsub.f32 %v1149_v23, %v184_v62 }
  0x21   :  { %977 = vmatpush3.bf16.msra.mxu0 %v1165_v39  ;;  %923 = vmatpush3.bf16.msra.mxu1 %v1165_v39  ;;  %v172_v61 = vand.u32 4294901760, %v171_v59  ;;  %v179_v1 = vand.u32 4294901760, %v178_v60  ;;  %v1213_v3 = vpack.c.bf16 %v191_v63, %v184_v62  ;;  %v192_v5 = vsub.f32 %v1151_v26, %v191_v63 }
  0x22   :  { %978 = vmatprep.subr.bf16.mxu0 %v1101_v2  ;;  %924 = vmatprep.subr.bf16.mxu1 %v1101_v2  ;;  %v1199_v57 = vpack.c.bf16 %v165_v53, %v158_v52  ;;  %v186_v7 = vand.u32 4294901760, %v185_v4  ;;  %v198_v9 = vand.u32 4294901760, %v1157_v30  ;;  %v205_v10 = vand.u32 4294901760, %v1159_v31 }
  0x23   :  { %v1219_v6 = vpack.c.bf16 %v179_v1, %v172_v61  ;;  %v193_v8 = vand.u32 4294901760, %v192_v5  ;;  %v212_v16 = vand.u32 4294901760, %v1169_v41  ;;  %v219_v20 = vand.u32 4294901760, %v1171_v42 }
  0x24   :  { %v1227_v12 = vpack.c.bf16 %v205_v10, %v198_v9  ;;  %v199_v13 = vsub.f32 %v1157_v30, %v198_v9  ;;  %v206_v14 = vsub.f32 %v1159_v31, %v205_v10  ;;  %v226_v35 = vand.u32 4294901760, %v1173_v43 }
  0x25   :  { %980 = vmatpush3.bf16.msra.mxu0 %v1183_v48  ;;  %926 = vmatpush3.bf16.msra.mxu1 %v1183_v48  ;;  %v1225_v11 = vpack.c.bf16 %v193_v8, %v186_v7  ;;  %v1000_v25 = vpack.c.bf16 %v219_v20, %v212_v16  ;;  %v213_v27 = vsub.f32 %v1169_v41, %v212_v16  ;;  %v233_v36 = vand.u32 4294901760, %v1175_v44 }
  0x26   :  { %981 = vmatprep.subr.bf16.mxu0 %v1101_v2  ;;  %927 = vmatprep.subr.bf16.mxu1 %v1101_v2  ;;  %v200_v15 = vand.u32 4294901760, %v199_v13  ;;  %v207_v24 = vand.u32 4294901760, %v206_v14  ;;  %v220_v28 = vsub.f32 %v1171_v42, %v219_v20  ;;  %v227_v40 = vsub.f32 %v1173_v43, %v226_v35 }
  0x27   :  { %v214_v33 = vand.u32 4294901760, %v213_v27  ;;  %v1003_v38 = vpack.c.bf16 %v233_v36, %v226_v35  ;;  %v234_v46 = vsub.f32 %v1175_v44, %v233_v36  ;;  %v952_v52 = vpack.c.bf16 %v1143_v19, %v1141_v18 }
  0x28   :  { %v943_v32 = vpack.c.bf16 %v207_v24, %v200_v15  ;;  %v221_v34 = vand.u32 4294901760, %v220_v28  ;;  %v228_v47 = vand.u32 4294901760, %v227_v40  ;;  %v955_v53 = vpack.c.bf16 %v1147_v22, %v1145_v21 }
  0x29   :  { %983 = vmatpush3.bf16.msra.mxu0 %v1195_v56  ;;  %929 = vmatpush3.bf16.msra.mxu1 %v1195_v56  ;;  %v235_v50 = vand.u32 4294901760, %v234_v46  ;;  %v958_v54 = vpack.c.bf16 %v1151_v26, %v1149_v23  ;;  %v961_v55 = vpack.c.bf16 %v1159_v31, %v1157_v30  ;;  %v964_v59 = vpack.c.bf16 %v1171_v42, %v1169_v41 }
  0x2a   :  { %984 = vmatprep.subr.bf16.mxu0 %v1101_v2  ;;  %930 = vmatprep.subr.bf16.mxu1 %v1101_v2  ;;  %v946_v37 = vpack.c.bf16 %v221_v34, %v214_v33  ;;  %v967_v60 = vpack.c.bf16 %v1175_v44, %v1173_v43  ;;  %v27_v61 = vlaneseq  ;;  %vm62_vm6 = vcmask 785408  }
  0x2b   :  { %v949_v51 = vpack.c.bf16 %v235_v50, %v228_v47 }
  0x2c   :  { %v28_v1 = vand.u32 127, %v27_v61 }
  0x2d   :  { %986 = vmatpush3.bf16.msra.mxu0 %v1209_v0  ;;  %932 = vmatpush3.bf16.msra.mxu1 %v1209_v0 }
  0x2e   :  { %987 = vmatprep.subr.bf16.mxu0 %v1101_v2  ;;  %933 = vmatprep.subr.bf16.mxu1 %v1101_v2 }
  0x95   :  { %v31_v62 = vpop.permute.xlu0 %30  ;;  %v40_v63 = vpop.permute.xlu1 %39 }
  0x96   :  { %vm32_vm1 = vcmp.eq.s32.totalorder %v28_v1, %v31_v62  ;;  %vm41_vm4 = vcmp.eq.s32.totalorder %v28_v1, %v40_v63 }
  0x9a   :  { %v35_v18 = vpop.permute.xlu0 %34  ;;  %v45_v19 = vpop.permute.xlu1 %44 }
  0x9b   :  { %vm36_vm2 = vcmp.eq.s32.totalorder %v28_v1, %v35_v18  ;;  %vm46_vm3 = vcmp.eq.s32.totalorder %v28_v1, %v45_v19 }
  0x9c   :  { %vm37_vm5 = vmor %vm32_vm1, %vm36_vm2 }
  0x9d   :  { %vm42_vm7 = vmor %vm37_vm5, %vm41_vm4 }
  0x9e   :  { %vm47_vm8 = vmor %vm42_vm7, %vm46_vm3 }
  0x9f   :  { %v671_v4 = vsel %vm47_vm8, 1.0, %v1105_v45 }
  0xa0   :  { %v64_v5 = vsel %vm62_vm6, %v671_v4, 0 }
  0xa1   :  { %v144_v7 = vsub.f32 %v64_v5, %v64_v5 }
  0xa3   :  { %v145_v8 = vand.u32 4294901760, %v144_v7 }
  0xa5   :  { %859 = vmatmul.mubr.f32.vlgmr.msra.gmra.mrb[0].mxu0 %v145_v8  ;;  %v146_v9 = vsub.f32 %v144_v7, %v145_v8 }
  0xa6   :  { %989 = vmatpush3.bf16.msra.mxu0 %v1187_v49  ;;  %885 = vmatprep.mubr.msk.f32.mxu0 %vm1104_vm0, %v1105_v45 }
  0xa7   :  { %990 = vmatprep.subr.bf16.mxu0 %v1101_v2  ;;  %v147_v10 = vand.u32 4294901760, %v146_v9 }
  0xa9   :  { %778 = vmatmul.mubr.f32.vlgmr.msra.gmra.mrb[0].mxu1 %v147_v10 }
  0xaa   :  { %935 = vmatpush3.bf16.msra.mxu1 %v1199_v57  ;;  %992 = vmatpush3.bf16.msra.mxu0 %v1201_v58 }
  0xab   :  { %936 = vmatprep.subr.bf16.mxu1 %v1101_v2  ;;  %993 = vmatprep.subr.bf16.mxu0 %v1101_v2 }
  0xac   :  { %804 = vmatprep.mubr.msk.f32.mxu1 %vm1104_vm0, %v1105_v45 }
  0xae   :  { %938 = vmatpush3.bf16.msra.mxu1 %v1219_v6  ;;  %995 = vmatpush3.bf16.msra.mxu0 %v1213_v3 }
  0xaf   :  { %939 = vmatprep.subr.bf16.mxu1 %v1101_v2  ;;  %996 = vmatprep.subr.bf16.mxu0 %v1101_v2 }
  0xb2   :  { %941 = vmatpush3.bf16.msra.mxu1 %v1225_v11  ;;  %998 = vmatpush3.bf16.msra.mxu0 %v1227_v12 }
  0xb3   :  { %942 = vmatprep.subr.bf16.mxu1 %v1101_v2  ;;  %999 = vmatprep.subr.bf16.mxu0 %v1101_v2 }
  0xb6   :  { %944 = vmatpush3.bf16.msra.mxu1 %v943_v32  ;;  %1001 = vmatpush3.bf16.msra.mxu0 %v1000_v25 }
  0xb7   :  { %945 = vmatprep.subr.bf16.mxu1 %v1101_v2  ;;  %1002 = vmatprep.subr.bf16.mxu0 %v1101_v2 }
  0xba   :  { %947 = vmatpush3.bf16.msra.mxu1 %v946_v37  ;;  %1004 = vmatpush3.bf16.msra.mxu0 %v1003_v38 }
  0xbb   :  { %948 = vmatprep.subr.bf16.mxu1 %v1101_v2  ;;  %1005 = vmatprep.subr.bf16.mxu0 %v1101_v2 }
  0xbd   :  { %886 = vmatmul.mubr.msk.f32.vlgmr.msra.gmra.mrb[0].mxu0 %vm62_vm6, %v671_v4 }
  0xbe   :  { %950 = vmatpush3.bf16.msra.mxu1 %v949_v51  ;;  %1007 = vmatpush3.bf16.msra.mxu0 %v1139_v17 }
  0xbf   :  { %951 = vmatprep.subr.bf16.mxu1 %v1101_v2  ;;  %1008 = vmatprep.subr.bf16.mxu0 %v1101_v2 }
  0xc0   :  { %912 = vmatprep.mubr.msk.f32.mxu0 %vm1104_vm0, %v1105_v45 }
  0xc1   :  { %805 = vmatmul.mubr.msk.f32.vlgmr.msra.gmra.mrb[0].mxu1 %vm62_vm6, %v671_v4 }
  0xc2   :  { %953 = vmatpush3.bf16.msra.mxu1 %v952_v52  ;;  %1010 = vmatpush3.bf16.msra.mxu0 %v1155_v29 }
  0xc3   :  { %954 = vmatprep.subr.bf16.mxu1 %v1101_v2  ;;  %1011 = vmatprep.subr.bf16.mxu0 %v1101_v2 }
  0xc4   :  { %831 = vmatprep.mubr.msk.f32.mxu1 %vm1104_vm0, %v1105_v45 }
  0xc6   :  { %956 = vmatpush3.bf16.msra.mxu1 %v955_v53  ;;  %1013 = vmatpush3.bf16.msra.mxu0 %v1165_v39 }
  0xc7   :  { %957 = vmatprep.subr.bf16.mxu1 %v1101_v2  ;;  %1014 = vmatprep.subr.bf16.mxu0 %v1101_v2 }
  0xca   :  { %959 = vmatpush3.bf16.msra.mxu1 %v958_v54  ;;  %1016 = vmatpush3.bf16.msra.mxu0 %v1183_v48 }
  0xcb   :  { %960 = vmatprep.subr.bf16.mxu1 %v1101_v2  ;;  %1017 = vmatprep.subr.bf16.mxu0 %v1101_v2 }
  0xce   :  { %962 = vmatpush3.bf16.msra.mxu1 %v961_v55  ;;  %1019 = vmatpush3.bf16.msra.mxu0 %v1195_v56 }
  0xcf   :  { %963 = vmatprep.subr.bf16.mxu1 %v1101_v2  ;;  %1020 = vmatprep.subr.bf16.mxu0 %v1101_v2 }
  0xd2   :  { %965 = vmatpush3.bf16.msra.mxu1 %v964_v59  ;;  %1022 = vmatpush3.bf16.msra.mxu0 %v1209_v0 }
  0xd3   :  { %966 = vmatprep.subr.bf16.mxu1 %v1101_v2 }
  0xd5   :  { %913 = vmatmul.mubr.msk.f32.vlgmr.msra.gmra.mrb[0].mxu0 %vm62_vm6, %v671_v4 }
  0xd6   :  { %968 = vmatpush3.bf16.msra.mxu1 %v967_v60 }
  0xd9   :  { %832 = vmatmul.mubr.f32.vlgmr.msra.gmra.mrb[0].mxu1 %v144_v7 }
 0x1a8   :  { %v651_v17 = vpop.f32.mrb[0].mxu0 }
 0x1a9   :  { %v914_v21 = vpop.f32.mrb[1].mxu0 }
 0x1ac   :  { %v376_v22 = vpop.f32.mrb[0].mxu1 }
 0x1ad   :  { %v1023_v23 = vadd.f32 %v651_v17, %v376_v22  ;;  %v833_v26 = vpop.f32.mrb[1].mxu1 }
 0x1af   :  { %655 = vst [vmem:[#allocation5] sm:$0xff] %v1023_v23 }
 0x1b0   :  { %1081 = shalt.err (!%p1078_p12)
}
 0x1b1   :  { %s1082_s28 = scalar_lea.hbm %s1330_s2, 128 }
 0x1b2   :  { %p1083_p13 = scmp.ne.s32.totalorder %s1330_s2, %s1082_s28  ;;  %p1086_p0 = scmp.lt.u32.totalorder %s1082_s28, %s1330_s2 }
 0x1b4   :  { %p1088_p1 = pnand %p1086_p0, %p1083_p13 }
 0x1b6   :  { %1091 = shalt.err (!%p1088_p1)
}
 0x1b7   :  { %665 = dma.vmem_to_hbm [thread:$0]  %s663_s1, 128, %s1330_s2, [#allocation4]  }
 0x1b8   :  { %1094 = dma.done.wait [#allocation4], 128  }
 0x1b9   :  { %1095 = vsyncadd [#allocation4], 4294967168 }
 0x1ba   :  { %669 = vsyncpa [#allocation3], 1 }
 0x1bb   :  { %670 = vsyncpa [#allocation4], 1 }

</bundles_post_ra>
